<compile_context>
chip_gen: v5e
topology: v5e:2x2
jax: 0.10.0
libtpu: 0.0.40
codegen_flags: <defaults>
</compile_context>

<pallas_src>
import functools

import numpy as np
import jax
import jax.numpy as jnp
from jax.experimental import pallas as pl
from jax.experimental.pallas import tpu as pltpu

R_COEF, G_COEF, B_COEF = 0.299, 0.587, 0.114


# ----------------------------------------------------------------------------
# Parameter construction (deterministic, mirrors FourierImagesLoss.__init__)
# ----------------------------------------------------------------------------
def generate_batt(size, d0, n):
    H, W = size
    xg, yg = np.meshgrid(
        np.arange(H, dtype=np.float64), np.arange(W, dtype=np.float64), indexing="ij"
    )
    # same operator precedence as the torch code: (dist2 ** 1) / 2 / d0
    return 1.0 / (1.0 + ((xg - H // 2) ** 2 + (yg - W // 2) ** 2) ** 1 / 2 / d0) ** n


def build_half_kernel(image_shape, d0=500, n=1):
    """(H, Wh) mask exactly as the torch module applies it to the rfft output
    (row flips, then kernel[:, -Wh:])."""
    H, W = image_shape
    ker = 1.0 - generate_batt((H, W), d0, n)
    ker[: H // 2] = np.flip(ker[: H // 2], 0)
    ker[H // 2 :] = np.flip(ker[H // 2 :], 0)
    Wh = W // 2 + 1
    return ker[:, W - Wh :].copy()                      # (H, Wh)


def build_full_kernel(image_shape, d0=500, n=1):
    """Hermitian-extended (H, W) mask; used only by the plain-JAX reference."""
    H, W = image_shape
    Wh = W // 2 + 1
    k_half = build_half_kernel(image_shape, d0, n)
    k_full = np.zeros((H, W), dtype=np.float64)
    k_full[:, :Wh] = k_half
    hh = (-np.arange(H)) % H
    for w in range(Wh, W):                              # Hermitian extension along W
        k_full[:, w] = k_half[hh, W - w]
    return k_full.astype(np.float32)


# ----------------------------------------------------------------------------
# Pallas kernel
# ----------------------------------------------------------------------------
def _fourier_loss_kernel(
    yp_ref, yt_ref,                      # (TB, 3, H, W) image blocks (caller dtype)
    chsh_ref,                            # (2H, H)     bf16  [cos_H ; sin_H]
    cws_ref,                             # (W, 2*Whp)  bf16  [cos_W | sin_W] (0-padded)
    w2_ref,                              # (H, Whp)    f32   Parseval spectral weights
    out_ref,                             # (1, 8, 128) f32   partial loss block
    *, tb, h, w, whp, c0, c1, inv_n_rgb, inv_n_hf,
):
    f32 = jnp.float32
    bf16 = jnp.bfloat16

    yp = yp_ref[...].astype(f32)
    yt = yt_ref[...].astype(f32)
    d = yp - yt                                          # (TB, 3, H, W)

    # plain RGB MSE term: sum of squares over the whole block
    sq = d * d
    sum_rgb = jnp.sum(sq.reshape(tb * 3 * h, w))

    # gray diff; the fft chain is linear, so one chain on the diff suffices
    g = d[:, 0] * R_COEF + d[:, 1] * G_COEF + d[:, 2] * B_COEF      # (TB, H, W)
    gs = g.reshape(tb * h, w).astype(bf16)                          # one wide cast

    chsh = chsh_ref[...]
    cws = cws_ref[...]
    w2 = w2_ref[...]

    # W-side forward DFT for all TB images at once: [pr | ps] in ONE matmul
    p = jnp.dot(gs, cws, preferred_element_type=f32)                # (TB*H, 2*Whp)
    pb = p.astype(bf16)                                             # one wide cast

    # H-side forward DFT + Parseval-weighted spectral energy, per image.
    # Each unrolled iteration: one MXU-filling matmul + a VPU weighted reduce.
    sum_hf = jnp.float32(0.0)
    for b in range(tb):
        prs = pb[b * h:(b + 1) * h]                                 # (H, 2*Whp), aligned
        t = jnp.dot(chsh, prs, preferred_element_type=f32)          # (2H, 2*Whp)
        fr = t[:h, :whp] - t[h:, whp:]                              #  Re F_half
        fi = t[:h, whp:] + t[h:, :whp]                              # -Im F_half
        sum_hf = sum_hf + jnp.sum(w2 * (fr * fr + fi * fi))

    partial = c0 * sum_rgb * inv_n_rgb + c1 * sum_hf * inv_n_hf
    out_ref[...] = jnp.broadcast_to(partial, out_ref.shape).astype(f32)


# ----------------------------------------------------------------------------
# Chip-aware sizing helpers
# ----------------------------------------------------------------------------
def _vmem_capacity_bytes():
    try:
        info = pltpu.get_tpu_info()
        cap = int(getattr(info, "vmem_capacity_bytes", 0))
        if cap > 0:
            return cap
    except Exception:
        pass
    return 64 * 1024 * 1024          # conservative default (v7x per-TensorCore)


def _pick_tb(batch, h, w, itemsize, vmem_cap, max_tb=16):
    """Largest batch divisor whose input block fits the per-step budget while
    keeping at least 2 grid steps (megacore / v7x second TensorCore)."""
    budget = min(8 * 1024 * 1024, vmem_cap // 16)
    best = 1
    for tb in range(1, min(batch, max_tb) + 1):
        if batch % tb:
            continue
        if batch >= 2 and batch // tb < 2:
            continue
        if tb * 3 * h * w * itemsize <= budget:
            best = tb
    return best


# ----------------------------------------------------------------------------
# Public builder
# ----------------------------------------------------------------------------
def build_fourier_images_loss(image_shape, coeffs=(1.0, 1.0), d0=500, n=1):
    """Returns loss_fn(y_pred, y_true) matching FourierImagesLoss.forward."""
    H, W = image_shape
    Wh = W // 2 + 1
    Whp = ((Wh + 127) // 128) * 128              # pad rfft lanes to a 128 multiple

    # H-side DFT matrix, [cos ; sin] stacked (one matmul gives both products).
    a_h = np.arange(H, dtype=np.float64)
    ang_h = 2.0 * np.pi * np.outer(a_h, a_h) / H
    chsh_np = np.concatenate([np.cos(ang_h), np.sin(ang_h)], axis=0)        # (2H, H)

    # W-side forward DFT matrix, [cos | sin] lane-fused and zero-padded.
    a_w = np.arange(W, dtype=np.float64)
    a_wh = np.arange(Wh, dtype=np.float64)
    ang_w = 2.0 * np.pi * np.outer(a_w, a_wh) / W                           # (W, Wh)
    cws_np = np.zeros((W, 2 * Whp), dtype=np.float64)
    cws_np[:, :Wh] = np.cos(ang_w)
    cws_np[:, Whp:Whp + Wh] = np.sin(ang_w)

    # Parseval weights: mse(hf_pred, hf_true) only needs sum(hf_diff^2); that is
    #   sum_{u, v<Wh} w2[u,v] * |rfft2(gray_diff)[u,v]|^2
    # with w2 = 2*k^2/(H*W) for the paired columns 0<v<W/2 and, for the
    # self-conjugate DC/Nyquist columns (whose imaginary part the one-sided
    # irfft drops), w2 = k_u*(k_u + k_mirror(u)) / (2*H*W).
    k_half = build_half_kernel((H, W), d0, n)                               # (H, Wh)
    mirror = (-np.arange(H)) % H
    weight = 2.0 * k_half * k_half
    weight[:, 0] = 0.5 * k_half[:, 0] * (k_half[:, 0] + k_half[mirror, 0])
    if W % 2 == 0:
        weight[:, Wh - 1] = 0.5 * k_half[:, Wh - 1] * (
            k_half[:, Wh - 1] + k_half[mirror, Wh - 1])
    w2_np = np.zeros((H, Whp), dtype=np.float32)
    w2_np[:, :Wh] = (weight / float(H * W)).astype(np.float32)

    chsh = jnp.asarray(chsh_np, dtype=jnp.bfloat16)
    cws = jnp.asarray(cws_np, dtype=jnp.bfloat16)
    w2 = jnp.asarray(w2_np)

    const_bytes = int(chsh.size) * 2 + int(cws.size) * 2 + int(w2.size) * 4
    c0, c1 = float(coeffs[0]), float(coeffs[1])
    vmem_cap = _vmem_capacity_bytes()

    def loss_fn(y_pred, y_true):
        B, C, Hi, Wi = y_pred.shape
        assert C == 3, "rgb2gray needs 3 channels"
        assert (Hi, Wi) == (H, W), "image_shape mismatch"
        assert y_true.shape == y_pred.shape
        # NOTE: no f32 upcast here -- the kernel accepts the caller's dtype
        # (bf16 inputs halve the HBM traffic) and upcasts inside VMEM.
        itemsize = max(jnp.dtype(y_pred.dtype).itemsize,
                       jnp.dtype(y_true.dtype).itemsize)

        tb = _pick_tb(B, H, W, itemsize, vmem_cap)
        grid_n = B // tb

        kernel = functools.partial(
            _fourier_loss_kernel,
            tb=tb, h=H, w=W, whp=Whp, c0=c0, c1=c1,
            inv_n_rgb=1.0 / float(B * C * H * W),
            inv_n_hf=1.0 / float(B * H * W),
        )

        img_spec = pl.BlockSpec((tb, C, H, W), lambda g: (g, 0, 0, 0))

        # VMEM ask derived from the actual buffer sizes (+headroom), chip-capped.
        in_block = 2 * tb * C * H * W * itemsize                 # both input blocks
        interm = (3 * tb * C * H * W + 6 * tb * H * Whp + 16 * H * Whp) * 4
        need = 2 * in_block + 2 * const_bytes + interm + 4 * 1024 * 1024
        vmem_limit = int(min(vmem_cap * 9 // 10,
                             max(2 * need, 32 * 1024 * 1024)))

        flops = 2 * B * H * (W + 2 * H) * (2 * Whp) + 12 * B * C * H * W
        bytes_accessed = (B * C * H * W * 2 * itemsize
                          + const_bytes + grid_n * 8 * 128 * 4)

        partials = pl.pallas_call(
            kernel,
            out_shape=jax.ShapeDtypeStruct((grid_n, 8, 128), jnp.float32),
            grid=(grid_n,),
            in_specs=[
                img_spec,                                        # y_pred block
                img_spec,                                        # y_true block
                pl.BlockSpec((2 * H, H), lambda g: (0, 0)),      # [cos_H ; sin_H]
                pl.BlockSpec((W, 2 * Whp), lambda g: (0, 0)),    # [cos_W | sin_W]
                pl.BlockSpec((H, Whp), lambda g: (0, 0)),        # Parseval weights
            ],
            out_specs=pl.BlockSpec((1, 8, 128), lambda g: (g, 0, 0)),
            compiler_params=pltpu.CompilerParams(
                dimension_semantics=("parallel",),
                vmem_limit_bytes=vmem_limit,
            ),
            cost_estimate=pl.CostEstimate(
                flops=int(flops),
                transcendentals=0,
                bytes_accessed=int(bytes_accessed),
            ),
        )(y_pred, y_true, chsh, cws, w2)

        # tiny final reduction of per-block partial losses in f32
        return jnp.sum(partials[:, 0, 0])

    # TODO(synk): pl.pallas_call is not differentiable as-is; wrap loss_fn in a
    # jax.custom_vjp (the backward pass can reuse the same DFT constants) before
    # using this loss with jax.grad for training.
    return loss_fn


# ----------------------------------------------------------------------------
# Plain-JAX reference (same math, via jnp.fft) for validation
# ----------------------------------------------------------------------------
def reference_loss(y_pred, y_true, k_full, coeffs=(1.0, 1.0)):
    def gray(x):
        return x[:, 0] * R_COEF + x[:, 1] * G_COEF + x[:, 2] * B_COEF

    def hf(g):
        return jnp.real(
            jnp.fft.ifft2(k_full[None].astype(jnp.complex64) * jnp.fft.fft2(g))
        )

    gp, gt = gray(y_pred), gray(y_true)
    d_rgb = y_pred - y_true
    d_hf = hf(gp) - hf(gt)
    return coeffs[0] * jnp.mean(d_rgb * d_rgb) + coeffs[1] * jnp.mean(d_hf * d_hf)


if __name__ == "__main__":
    B, C, H, W = 2, 3, 16, 16            # image_shape=(16, 16) for this synthetic run
    key = jax.random.PRNGKey(0)
    k1, k2 = jax.random.split(key)
    y_pred = jax.random.normal(k1, (B, C, H, W), dtype=jnp.float32)
    y_true = jax.random.normal(k2, (B, C, H, W), dtype=jnp.float32)

    loss_fn = build_fourier_images_loss((H, W), coeffs=(1.0, 1.0), d0=500, n=1)
    loss = jax.block_until_ready(loss_fn(y_pred, y_true))

    k_full = jnp.asarray(build_full_kernel((H, W), d0=500, n=1))
    ref = jax.block_until_ready(reference_loss(y_pred, y_true, k_full))

    err = abs(float(loss) - float(ref))
    tol = 2e-3 + 3e-3 * abs(float(ref))
    assert err < tol, f"mismatch: pallas={float(loss)} ref={float(ref)} err={err}"
    print("KERNEL_OK")
</pallas_src>

<mosaic_0001>
module attributes {stable_mosaic.version = 11 : i64} {
  func.func @_fourier_loss_kernel(%arg0: i32, %arg1: memref<1x3x16x16xf32, #tpu.memory_space<vmem>>, %arg2: memref<1x3x16x16xf32, #tpu.memory_space<vmem>>, %arg3: memref<32x16xbf16, #tpu.memory_space<vmem>>, %arg4: memref<16x256xbf16, #tpu.memory_space<vmem>>, %arg5: memref<16x128xf32, #tpu.memory_space<vmem>>, %arg6: memref<1x8x128xf32, #tpu.memory_space<vmem>>) attributes {dimension_semantics = [#tpu.dimension_semantics<parallel>], iteration_bounds = array<i64: 2>, scalar_prefetch = 0 : i64, scratch_operands = 0 : i64, tpu.core_type = #tpu.core_type<tc>, window_params = [{transform_indices = @transform_0, window_bounds = array<i64: 1, 3, 16, 16>}, {transform_indices = @transform_1, window_bounds = array<i64: 1, 3, 16, 16>}, {pipeline_mode = #tpu.pipeline_mode<synchronous>, transform_indices = @transform_2, window_bounds = array<i64: 32, 16>}, {pipeline_mode = #tpu.pipeline_mode<synchronous>, transform_indices = @transform_3, window_bounds = array<i64: 16, 256>}, {pipeline_mode = #tpu.pipeline_mode<synchronous>, transform_indices = @transform_4, window_bounds = array<i64: 16, 128>}, {transform_indices = @transform_5, window_bounds = array<i64: 1, 8, 128>}]} {
    %c0 = arith.constant 0 : index
    %c0_0 = arith.constant 0 : index
    %c0_1 = arith.constant 0 : index
    %c0_2 = arith.constant 0 : index
    %0 = vector.load %arg1[%c0, %c0_0, %c0_1, %c0_2] : memref<1x3x16x16xf32, #tpu.memory_space<vmem>>, vector<1x3x16x16xf32>
    %c0_3 = arith.constant 0 : index
    %c0_4 = arith.constant 0 : index
    %c0_5 = arith.constant 0 : index
    %c0_6 = arith.constant 0 : index
    %1 = vector.load %arg2[%c0_3, %c0_4, %c0_5, %c0_6] : memref<1x3x16x16xf32, #tpu.memory_space<vmem>>, vector<1x3x16x16xf32>
    %2 = arith.subf %0, %1 : vector<1x3x16x16xf32>
    %3 = arith.mulf %2, %2 : vector<1x3x16x16xf32>
    %4 = vector.shape_cast %3 : vector<1x3x16x16xf32> to vector<48x16xf32>
    %5 = vector.shape_cast %4 : vector<48x16xf32> to vector<1x48x16xf32>
    %cst = arith.constant dense<0.000000e+00> : vector<1xf32>
    %6 = vector.multi_reduction <add>, %5, %cst [1, 2] : vector<1x48x16xf32> to vector<1xf32>
    %7 = vector.shape_cast %6 : vector<1xf32> to vector<1x1x1xf32>
    %8 = vector.extract %7[0, 0, 0] : f32 from vector<1x1x1xf32>
    %9 = vector.extract_strided_slice %2 {offsets = [0, 0, 0, 0], sizes = [1, 1, 16, 16], strides = [1, 1, 1, 1]} : vector<1x3x16x16xf32> to vector<1x1x16x16xf32>
    %10 = vector.shape_cast %9 : vector<1x1x16x16xf32> to vector<1x16x16xf32>
    %cst_7 = arith.constant 2.990000e-01 : f32
    %11 = vector.broadcast %cst_7 : f32 to vector<1x16x16xf32>
    %12 = arith.mulf %10, %11 : vector<1x16x16xf32>
    %13 = vector.extract_strided_slice %2 {offsets = [0, 1, 0, 0], sizes = [1, 1, 16, 16], strides = [1, 1, 1, 1]} : vector<1x3x16x16xf32> to vector<1x1x16x16xf32>
    %14 = vector.shape_cast %13 : vector<1x1x16x16xf32> to vector<1x16x16xf32>
    %cst_8 = arith.constant 5.870000e-01 : f32
    %15 = vector.broadcast %cst_8 : f32 to vector<1x16x16xf32>
    %16 = arith.mulf %14, %15 : vector<1x16x16xf32>
    %17 = arith.addf %12, %16 : vector<1x16x16xf32>
    %18 = vector.extract_strided_slice %2 {offsets = [0, 2, 0, 0], sizes = [1, 1, 16, 16], strides = [1, 1, 1, 1]} : vector<1x3x16x16xf32> to vector<1x1x16x16xf32>
    %19 = vector.shape_cast %18 : vector<1x1x16x16xf32> to vector<1x16x16xf32>
    %cst_9 = arith.constant 1.140000e-01 : f32
    %20 = vector.broadcast %cst_9 : f32 to vector<1x16x16xf32>
    %21 = arith.mulf %19, %20 : vector<1x16x16xf32>
    %22 = arith.addf %17, %21 : vector<1x16x16xf32>
    %23 = vector.shape_cast %22 : vector<1x16x16xf32> to vector<16x16xf32>
    %24 = arith.truncf %23 : vector<16x16xf32> to vector<16x16xbf16>
    %c0_10 = arith.constant 0 : index
    %c0_11 = arith.constant 0 : index
    %25 = vector.load %arg3[%c0_10, %c0_11] : memref<32x16xbf16, #tpu.memory_space<vmem>>, vector<32x16xbf16>
    %c0_12 = arith.constant 0 : index
    %c0_13 = arith.constant 0 : index
    %26 = vector.load %arg4[%c0_12, %c0_13] : memref<16x256xbf16, #tpu.memory_space<vmem>>, vector<16x256xbf16>
    %c0_14 = arith.constant 0 : index
    %c0_15 = arith.constant 0 : index
    %27 = vector.load %arg5[%c0_14, %c0_15] : memref<16x128xf32, #tpu.memory_space<vmem>>, vector<16x128xf32>
    %cst_16 = arith.constant dense<0.000000e+00> : vector<16x256xf32>
    %28 = tpu.matmul %24, %26, %cst_16 {dimension_numbers = #tpu.dot_dimension_numbers<[1], [0], [0], [1], [0, 0, 1, 1], [], []>} : vector<16x16xbf16>, vector<16x256xbf16>, vector<16x256xf32> -> vector<16x256xf32>
    %29 = arith.truncf %28 : vector<16x256xf32> to vector<16x256xbf16>
    %cst_17 = arith.constant dense<0.000000e+00> : vector<32x256xf32>
    %30 = tpu.matmul %25, %29, %cst_17 {dimension_numbers = #tpu.dot_dimension_numbers<[1], [0], [0], [1], [0, 0, 1, 1], [], []>} : vector<32x16xbf16>, vector<16x256xbf16>, vector<32x256xf32> -> vector<32x256xf32>
    %31 = vector.extract_strided_slice %30 {offsets = [0, 0], sizes = [16, 128], strides = [1, 1]} : vector<32x256xf32> to vector<16x128xf32>
    %32 = vector.extract_strided_slice %30 {offsets = [16, 128], sizes = [16, 128], strides = [1, 1]} : vector<32x256xf32> to vector<16x128xf32>
    %33 = arith.subf %31, %32 : vector<16x128xf32>
    %34 = vector.extract_strided_slice %30 {offsets = [0, 128], sizes = [16, 128], strides = [1, 1]} : vector<32x256xf32> to vector<16x128xf32>
    %35 = vector.extract_strided_slice %30 {offsets = [16, 0], sizes = [16, 128], strides = [1, 1]} : vector<32x256xf32> to vector<16x128xf32>
    %36 = arith.addf %34, %35 : vector<16x128xf32>
    %37 = arith.mulf %33, %33 : vector<16x128xf32>
    %38 = arith.mulf %36, %36 : vector<16x128xf32>
    %39 = arith.addf %37, %38 : vector<16x128xf32>
    %40 = arith.mulf %27, %39 : vector<16x128xf32>
    %41 = vector.shape_cast %40 : vector<16x128xf32> to vector<1x16x128xf32>
    %cst_18 = arith.constant dense<0.000000e+00> : vector<1xf32>
    %42 = vector.multi_reduction <add>, %41, %cst_18 [1, 2] : vector<1x16x128xf32> to vector<1xf32>
    %43 = vector.shape_cast %42 : vector<1xf32> to vector<1x1x1xf32>
    %44 = vector.extract %43[0, 0, 0] : f32 from vector<1x1x1xf32>
    %cst_19 = arith.constant 0.000000e+00 : f32
    %45 = arith.addf %cst_19, %44 : f32
    %cst_20 = arith.constant 1.000000e+00 : f32
    %46 = arith.mulf %cst_20, %8 : f32
    %cst_21 = arith.constant 6.51041686E-4 : f32
    %47 = arith.mulf %46, %cst_21 : f32
    %cst_22 = arith.constant 1.000000e+00 : f32
    %48 = arith.mulf %cst_22, %45 : f32
    %cst_23 = arith.constant 0.001953125 : f32
    %49 = arith.mulf %48, %cst_23 : f32
    %50 = arith.addf %47, %49 : f32
    %51 = vector.broadcast %50 : f32 to vector<1x8x128xf32>
    %c0_24 = arith.constant 0 : index
    %c0_25 = arith.constant 0 : index
    %c0_26 = arith.constant 0 : index
    %52 = vector.load %arg6[%c0_24, %c0_25, %c0_26] : memref<1x8x128xf32, #tpu.memory_space<vmem>>, vector<1x8x128xf32>
    tpu.vector_store %arg6[%c0_24, %c0_25, %c0_26], %51 {strides = array<i32>} : memref<1x8x128xf32, #tpu.memory_space<vmem>>, vector<1x8x128xf32>,
    return
  }
  func.func @transform_0(%arg0: i32) -> (i32, i32, i32, i32) {
    %c0_i32 = arith.constant 0 : i32
    %c0_i32_0 = arith.constant 0 : i32
    %c0_i32_1 = arith.constant 0 : i32
    %c0_i32_2 = arith.constant 0 : i32
    return %arg0, %c0_i32, %c0_i32_0, %c0_i32_1 : i32, i32, i32, i32
  }
  func.func @transform_1(%arg0: i32) -> (i32, i32, i32, i32) {
    %c0_i32 = arith.constant 0 : i32
    %c0_i32_0 = arith.constant 0 : i32
    %c0_i32_1 = arith.constant 0 : i32
    %c0_i32_2 = arith.constant 0 : i32
    return %arg0, %c0_i32, %c0_i32_0, %c0_i32_1 : i32, i32, i32, i32
  }
  func.func @transform_2(%arg0: i32) -> (i32, i32) {
    %c0_i32 = arith.constant 0 : i32
    %c0_i32_0 = arith.constant 0 : i32
    %c0_i32_1 = arith.constant 0 : i32
    return %c0_i32, %c0_i32_0 : i32, i32
  }
  func.func @transform_3(%arg0: i32) -> (i32, i32) {
    %c0_i32 = arith.constant 0 : i32
    %c0_i32_0 = arith.constant 0 : i32
    %c0_i32_1 = arith.constant 0 : i32
    return %c0_i32, %c0_i32_0 : i32, i32
  }
  func.func @transform_4(%arg0: i32) -> (i32, i32) {
    %c0_i32 = arith.constant 0 : i32
    %c0_i32_0 = arith.constant 0 : i32
    %c0_i32_1 = arith.constant 0 : i32
    return %c0_i32, %c0_i32_0 : i32, i32
  }
  func.func @transform_5(%arg0: i32) -> (i32, i32, i32) {
    %c0_i32 = arith.constant 0 : i32
    %c0_i32_0 = arith.constant 0 : i32
    %c0_i32_1 = arith.constant 0 : i32
    return %arg0, %c0_i32, %c0_i32_0 : i32, i32, i32
  }
}

</mosaic_0001>

<bundles_post_ra>
// kernel: tpu_custom_call.1
= control target key start
LH: loop header
LB: loop body
LE: loop exit
PB: predicated region body
PF: predicated region fallthrough
CT: control target
= control target key end

     0   :  { %s1123_s0 = inlined_call_operand.hbm [shape: f32[2,3,16,16], index: 0, kind: input, shape index: {}]   ;;  %s1124_s1 = inlined_call_operand.hbm [shape: f32[2,3,16,16], index: 1, kind: input, shape index: {}]   ;;  %s1125_s2 = inlined_call_operand.vmem [shape: bf16[32,16], index: 2, kind: input, shape index: {}]   ;;  %s1126_s3 = inlined_call_operand.vmem [shape: bf16[16,256], index: 3, kind: input, shape index: {}]   ;;  %s1127_s4 = inlined_call_operand.hbm [shape: f32[16,128], index: 4, kind: input, shape index: {}]   ;;  %s1128_s5 = inlined_call_operand.hbm [shape: f32[2,8,128], index: 5, kind: output, shape index: {}]  }
   0x1   :  { %1136 = sst [smem:[#allocation16_spill]] %s1127_s4 }
   0x2   :  { %10 = vsyncpa [#allocation3], 0 }
   0x3   :  { %12 = vsyncpa [#allocation3 + $0x1], 0 }
   0x4   :  { %13 = vsyncpa [#allocation6], 0 }
   0x5   :  { %15 = vsyncpa [#allocation6 + $0x1], 0 }
   0x6   :  { %16 = vsyncpa [#allocation4], 0 }
   0x7   :  { %18 = vsyncpa [#allocation4 + $0x1], 0  ;;  %s922_s18 = smov 0   ;;  %s924_s19 = smov 0  }
   0x8   :  { %s926_s20 = smov 0   ;;  %s928_s21 = smov 0  }
   0x9 LB: > { %1137 = sst [smem:[#allocation13_spill]] %s883_s20  ;;  %s943_s22 = sadd.s32 4294967295, %s887_s21   ;;  %s887_s21 = sphi %s928_s21, %s1149_s21   ;;  %s883_s20 = sphi %s926_s20, %s1151_s20   ;;  %s879_s19 = sphi %s924_s19, %s1153_s19   ;;  %s875_s18 = sphi %s922_s18, %s1152_s18  }
   0xa   : > { %s611_s23 = sadd.s32 4294967294, %s887_s21   ;;  %p44_p0 = scmp.ne.s32.totalorder %s879_s19, %s875_s18 }
   0xb   : > { %p45_p1 = scmp.eq.s32.totalorder %s943_s22, 0  ;;  %p157_p2 = scmp.eq.s32.totalorder %s943_s22, 1 }
   0xc   : > { %p163_p3 = scmp.eq.s32.totalorder %s611_s23, 1  ;;  %p612_p5 = scmp.ge.s32.totalorder %s887_s21, 1 }
   0xd   : > { %p952_p4 = por %p45_p1, %p44_p0  ;;  %p170_p7 = scmp.lt.s32.totalorder %s887_s21, 3 }
   0xe   : > { %p957_p6 = por %p163_p3, %p44_p0  ;;  %s1140_s4 = sld [smem:[#allocation16_spill]] }
   0xf   : > { %p965_p8 = pnand %p612_p5, %p170_p7  ;;  %s889_s30 = smov [#allocation7]  }
  0x10   : > { %s189_s6 = sshll.u32 %s889_s30, 4  ;;  %s975_s7 = sadd.s32 1, %s887_s21   ;;  %s190_s6 = int_to_ptr.vmem [resolvable:$true] %s189_s6 }
  0x11   : > { %p669_p9 = pneg %p965_p8  ;;  %1142 = sst [smem:[#allocation14_spill]] %s975_s7 }
  0x12   : > { %s1129_s8 = smov 128   ;;  %s1131_s9 = smov 8  }
  0x13   : > { %p670_p10 = pnand %p669_p9, %p45_p1  ;;  %s28_s10 = ssub.s32 %s887_s21, %s975_s7 }
  0x14   : > { %s187_s28 = sshll.u32 %s1140_s4, 4  ;;  %s31_s11 = sadd.s32 1, %s883_s20  ;;  %s188_s28 = int_to_ptr.hbm [resolvable:$true] %s187_s28 }
  0x15   : > { %672 = dma.hbm_to_vmem [thread:$0]  (!%p670_p10), %s188_s28, 256, %s190_s6, [#allocation6], %s1129_s8, %s1129_s8, %s1131_s9  }
  0x16   : > { %p29_p12 = scmp.eq.s32.totalorder %s28_s10, 0  ;;  %p38_p13 = scmp.ne.s32.totalorder %s883_s20, %s879_s19 }
  0x17   : > { %p39_p0 = scmp.eq.s32.totalorder %s887_s21, 0  ;;  %p685_p3 = scmp.lt.s32.totalorder %s887_s21, 2 }
  0x18   : > { %s988_s12 = scalar_select %p29_p12, %s883_s20, %s31_s11  }
  0x19   : > { %p40_p5 = por %p39_p0, %p38_p13  ;;  %p992_p7 = por %p157_p2, %p38_p13 }
  0x1a   : > { %1143 = sst [smem:[#allocation15_spill]] %s988_s12  ;;  %s203_s14 = sand.u32 1, %s883_s20  }
  0x1b   : > { %s651_s15 = smul.u32 48, %s887_s21  ;;  %p1001_p9 = pnand %p685_p3, %p40_p5 }
  0x1c   : > { %s650_s16 = smul.u32 48, %s203_s14  ;;  %s204_s10 = scalar_lea.sflag [#allocation3], %s203_s14 }
  0x1d   : > { %s212_s26 = scalar_lea.hbm %s1123_s0, %s651_s15  ;;  %p757_p10 = pneg %p1001_p9 }
  0x1e   : > { %s213_s28 = sshll.u32 %s212_s26, 4  ;;  %s207_s30 = scalar_lea.vmem [#allocation2], %s650_s16  ;;  %s214_s28 = int_to_ptr.hbm [resolvable:$true] %s213_s28 }
  0x1f   : > { %s215_s6 = sshll.u32 %s207_s30, 4  ;;  %s753_s11 = sshra.s32 %s214_s28, 4  ;;  %s216_s6 = int_to_ptr.vmem [resolvable:$true] %s215_s6  ;;  %s754_s11 = int_to_ptr.hbm [resolvable:$true] %s753_s11 }
  0x20   : > { %s755_s8 = scalar_lea.hbm %s754_s11, 48  ;;  %s760_s9 = scalar_lea.hbm %s1123_s0, 96 }
  0x21   : > { %p756_p2 = scmp.ne.s32.totalorder %s754_s11, %s755_s8  ;;  %p761_p0 = scmp.lt.s32.totalorder %s754_s11, %s1123_s0 }
  0x22   : > { %p762_p3 = scmp.lt.s32.totalorder %s760_s9, %s755_s8 }
  0x23   : > { %p758_p12 = pnand %p757_p10, %p756_p2 }
  0x24   : > { %p763_p5 = por %p762_p3, %p761_p0 }
  0x25   : > { %p759_p13 = pneg %p758_p12 }
  0x27   : > { %p764_p11 = pnand %p763_p5, %p759_p13 }
  0x29   : > { %767 = shalt.err (!%p764_p11)
}
  0x2a   : > { %s1146_s14 = smov 8   ;;  %s1147_s30 = smov 128  }
  0x2b   : > { %676 = dma.hbm_to_vmem [thread:$0]  (!%p1001_p9), %s214_s28, 768, %s216_s6, %s204_s10, %s1147_s30, %s1147_s30, %s1146_s14  }
  0x2c   : > { %s225_s12 = sand.u32 1, %s887_s21   ;;  %s234_s23 = scalar_lea.hbm %s1124_s1, %s651_s15 }
  0x2d   : > { %s235_s7 = sshll.u32 %s234_s23, 4  ;;  %s229_s4 = scalar_lea.vmem [#allocation5], %s650_s16  ;;  %s236_s7 = int_to_ptr.hbm [resolvable:$true] %s235_s7 }
  0x2e   : > { %s237_s11 = sshll.u32 %s229_s4, 4  ;;  %s226_s8 = scalar_lea.sflag [#allocation6], %s225_s12  ;;  %s238_s11 = int_to_ptr.vmem [resolvable:$true] %s237_s11 }
  0x2f   : > { %s783_s9 = sshra.s32 %s236_s7, 4  ;;  %s790_s10 = scalar_lea.hbm %s1124_s1, 96  ;;  %s784_s9 = int_to_ptr.hbm [resolvable:$true] %s783_s9 }
  0x30   : > { %s785_s26 = scalar_lea.hbm %s784_s9, 48  ;;  %p791_p13 = scmp.lt.s32.totalorder %s784_s9, %s1124_s1 }
  0x31   : > { %p786_p11 = scmp.ne.s32.totalorder %s784_s9, %s785_s26  ;;  %p792_p0 = scmp.lt.s32.totalorder %s790_s10, %s785_s26 }
  0x33   : > { %p788_p2 = pnand %p786_p11, %p757_p10  ;;  %p793_p3 = por %p792_p0, %p791_p13 }
  0x35   : > { %p789_p12 = pneg %p788_p2 }
  0x37   : > { %p794_p5 = pnand %p793_p3, %p789_p12 }
  0x39   : > { %797 = shalt.err (!%p794_p5)
}
  0x3a   : > { %679 = dma.hbm_to_vmem [thread:$0]  (!%p1001_p9), %s236_s7, 768, %s238_s11, %s226_s8, %s1147_s30, %s1147_s30, %s1146_s14  }
  0x3b   : > { %249 = sbr.rel (%p965_p8) target bundleno = 577 (0x241), region = 40  ;;  %s1042_s12 = sand.u32 (!%p965_p8), 1, %s879_s19  }
  0x3c   : > { %s654_s16 = smul.u32 (!%p965_p8), 48, %s1042_s12  ;;  %s252_s17 = scalar_lea.sflag (!%p965_p8), [#allocation3], %s1042_s12 }
  0x3e   : > { %s255_s23 = scalar_lea.vmem (!%p965_p8), [#allocation2], %s654_s16 }
  0x40   : > { %858 = dma.done.wait (%p952_p4), %s252_s17, 768  }
  0x41   : > { %860 = vsyncadd (%p952_p4), %s252_s17, 4294966528  ;;  %s261_s7 = sand.u32 1, %s943_s22   ;;  %s265_s29 = scalar_lea.vmem [#allocation5], %s654_s16 }
  0x42   : > { %s262_s27 = scalar_lea.sflag [#allocation6], %s261_s7 }
  0x43   : > { %862 = dma.done.wait (%p952_p4), %s262_s27, 768  }
  0x44   : > { %864 = vsyncadd (%p952_p4), %s262_s27, 4294966528 }
  0x45   : > { %866 = dma.done.wait (%p45_p1), [#allocation6], 256  }
  0x46   : > { %868 = vsyncadd (%p45_p1), [#allocation6], 4294967040  ;;  %v622_v0 = vld [vmem:[%s1126_s3] sm:$0xf]  ;;  %v649_v1 = vld [vmem:[%s1126_s3 + $0x4] sm:$0xf0] }
  0x47   : > { %v648_v2 = vld [vmem:[%s1126_s3 + $0x4] sm:$0xf]  ;;  %v623_v3 = vor.u32 %v649_v1, %v622_v0  ;;  %v624_v4 = vld [vmem:[%s1126_s3 + $0x8] sm:$0xf0]  ;;  %vm328_vm0 = vcmask 130048   ;;  %s619_s15 = sshll.u32 %s1042_s12, 3 }
  0x48   : > { %v304_v5 = vld [vmem:[%s255_s23] sm:$0xff]  ;;  %v305_v6 = vld [vmem:[%s255_s23 + $0x8] sm:$0xff]  ;;  %v627_v7 = vor.u32 %v648_v2, %v624_v4  ;;  %v306_v8 = vld [vmem:[%s255_s23 + $0x10] sm:$0xff]  ;;  %s643_s16 = sshll.u32 %s943_s22, 3  ;;  %s494_s24 = scalar_lea.sflag [#allocation4], %s1042_s12 }
  0x49   : > { %v307_v9 = vld [vmem:[%s255_s23 + $0x18] sm:$0xff]  ;;  %v308_v10 = vld [vmem:[%s255_s23 + $0x20] sm:$0xff]  ;;  %388 = vmatpush.bf16.msra.mxu0 %v623_v3  ;;  %v309_v11 = vld [vmem:[%s255_s23 + $0x28] sm:$0xff]  ;;  %s504_s27 = scalar_lea.hbm %s1128_s5, %s643_s16  ;;  %s833_s10 = scalar_lea.hbm %s1128_s5, 16 }
  0x4a   : > { %v310_v12 = vld [vmem:[%s265_s29] sm:$0xff]  ;;  %v311_v13 = vld [vmem:[%s265_s29 + $0x8] sm:$0xff]  ;;  %402 = vmatpush.bf16.msra.mxu1 %v627_v7  ;;  %v312_v14 = vld [vmem:[%s265_s29 + $0x10] sm:$0xff]  ;;  %s508_s8 = sshll.u32 %s504_s27, 4  ;;  %s509_s8 = int_to_ptr.hbm [resolvable:$true] %s508_s8 }
  0x4b   : > { %v313_v15 = vld [vmem:[%s265_s29 + $0x18] sm:$0xff]  ;;  %v314_v16 = vld [vmem:[%s265_s29 + $0x20] sm:$0xff]  ;;  %v316_v17 = vsub.f32 %v304_v5, %v310_v12  ;;  %v317_v18 = vsub.f32 %v305_v6, %v311_v13  ;;  %v315_v19 = vld [vmem:[%s265_s29 + $0x28] sm:$0xff]  ;;  %v318_v20 = vsub.f32 %v306_v8, %v312_v14  ;;  %s302_s29 = scalar_lea.vmem [#allocation8], %s619_s15  ;;  %s827_s26 = sshra.s32 %s509_s8, 4  ;;  %s828_s26 = int_to_ptr.hbm [resolvable:$true] %s827_s26 }
  0x4c   : > { %v319_v21 = vsub.f32 %v307_v9, %v313_v15  ;;  %v320_v22 = vsub.f32 %v308_v10, %v314_v16  ;;  %v321_v23 = vsub.f32 %v309_v11, %v315_v19  ;;  %v646_v41 = vld [vmem:[%s1125_s2] sm:$0xff]  ;;  %v647_v42 = vld [vmem:[%s1125_s2 + $0x8] sm:$0xff]  ;;  %s506_s14 = sshll.u32 %s302_s29, 4  ;;  %s829_s22 = scalar_lea.hbm %s828_s26, 8  ;;  %s507_s14 = int_to_ptr.vmem [resolvable:$true] %s506_s14 }
  0x4d   : > { %v349_v24 = vmul.f32 0.299, %v316_v17  ;;  %v350_v25 = vmul.f32 0.299, %v317_v18  ;;  %v351_v26 = vmul.f32 0.587, %v318_v20  ;;  %v322_v43 = vmul.f32 %v316_v17, %v316_v17  ;;  %p830_p1 = scmp.ne.s32.totalorder %s828_s26, %s829_s22  ;;  %p834_p9 = scmp.lt.s32.totalorder %s828_s26, %s1128_s5 }
  0x4e   : > { %v352_v27 = vmul.f32 0.587, %v319_v21  ;;  %v355_v28 = vmul.f32 0.114, %v320_v22  ;;  %v356_v29 = vmul.f32 0.114, %v321_v23  ;;  %v323_v44 = vmul.f32 %v317_v18, %v317_v18  ;;  %p835_p10 = scmp.lt.s32.totalorder %s833_s10, %s829_s22 }
  0x4f   : > { %v353_v30 = vadd.f32 %v351_v26, %v349_v24  ;;  %v324_v45 = vmul.f32 %v318_v20, %v318_v20  ;;  %v329_v46 = vsel %vm328_vm0, %v322_v43, 0.0  ;;  %v325_v49 = vmul.f32 %v319_v21, %v319_v21  ;;  %v366_v13 = vld [vmem:[#allocation7] sm:$0xff]  ;;  %v367_v14 = vld [vmem:[#allocation7 + $0x8] sm:$0xff]  ;;  %p831_p4 = pnand %p830_p1, %p992_p7 }
  0x50   : > { %v354_v31 = vadd.f32 %v352_v27, %v350_v25  ;;  %v330_v47 = vsel %vm328_vm0, %v323_v44, 0.0  ;;  %v326_v52 = vmul.f32 %v320_v22, %v320_v22  ;;  %v327_v55 = vmul.f32 %v321_v23, %v321_v23  ;;  %p836_p11 = por %p835_p10, %p834_p9 }
  0x51   : > { %v357_v32 = vadd.f32 %v355_v28, %v353_v30  ;;  %v331_v48 = vadd.f32 %v330_v47, %v329_v46  ;;  %v332_v50 = vsel %vm328_vm0, %v324_v45, 0.0  ;;  %v334_v53 = vsel %vm328_vm0, %v325_v49, 0.0  ;;  %p832_p8 = pneg %p831_p4 }
  0x52   : > { %v358_v33 = vadd.f32 %v356_v29, %v354_v31  ;;  %v336_v56 = vsel %vm328_vm0, %v326_v52, 0.0  ;;  %v338_v58 = vsel %vm328_vm0, %v327_v55, 0.0 }
  0x53   : > { %v333_v51 = vadd.f32 %v332_v50, %v331_v48  ;;  %p837_p2 = pnand %p836_p11, %p832_p8 }
  0x54   : > { %v359_v34 = vpack.c.bf16 %v358_v33, %v357_v32 }
  0x55   : > { %v335_v54 = vadd.f32 %v334_v53, %v333_v51 }
  0x56   : > { %628 = vmatmul.msk.bf16.vlgmr.msra.gmra.mxu0 %vm328_vm0, %v359_v34  ;;  %629 = vmatmul.msk.bf16.vlgmr.msra.gmra.mxu1 %vm328_vm0, %v359_v34 }
  0x57   : > { %v337_v57 = vadd.f32 %v336_v56, %v335_v54 }
  0x59   : > { %v339_v59 = vadd.f32 %v338_v58, %v337_v57 }
  0x5b   : > { %340 = vadd.xlane.f32.xlu0 %v339_v59 }
  0xce   : > { %v341_v19 = vpop.xlane.xlu0 %340 }
  0xcf   : > { %v342_v20 = vrot.slane %v341_v19, 4 }
  0xd1   : > { %v343_v21 = vadd.f32 %v342_v20, %v341_v19 }
  0xd3   : > { %v390_v35 = vpop.f32.mrf.mxu0  ;;  %v404_v36 = vpop.f32.mrf.mxu1  ;;  %v344_v22 = vrot.slane %v343_v21, 2 }
  0xd5   : > { %v345_v23 = vadd.f32 %v344_v22, %v343_v21 }
  0xd7   : > { %v346_v24 = vrot.slane %v345_v23, 1 }
  0xd9   : > { %v347_v25 = vadd.f32 %v346_v24, %v345_v23 }
  0xdb   : > { %v392_v37 = vpop.f32.mrf.mxu0  ;;  %v406_v38 = vpop.f32.mrf.mxu1  ;;  %655 = vpush %v347_v25 }
  0xdc   : > { %v409_v39 = vpack.c.bf16 %v392_v37, %v390_v35  ;;  %v410_v40 = vpack.c.bf16 %v406_v38, %v404_v36 }
  0xde   : > { %434 = vmatpush.bf16.msra.mxu2 %v409_v39  ;;  %453 = vmatpush.bf16.msra.mxu3 %v410_v40 }
  0xe1   : > { %638 = vmatmul.msk.bf16.vlgmr.msra.gmra.mxu2 %vm328_vm0, %v646_v41  ;;  %640 = vmatmul.msk.bf16.vlgmr.msra.gmra.mxu3 %vm328_vm0, %v646_v41 }
  0xf1   : > { %639 = vmatmul.msk.bf16.gmra.mxu2 %vm328_vm0, %v647_v42  ;;  %641 = vmatmul.msk.bf16.gmra.mxu3 %vm328_vm0, %v647_v42 }
 0x10c   : > { %s656_s17 = spop %655 }
 0x10d   : > { %s488_s30 = smul.f32 0.0006510417, %s656_s17 }
 0x164   : > { %v436_v60 = vpop.f32.mrf.mxu2  ;;  %v455_v61 = vpop.f32.mrf.mxu3 }
 0x16c   : > { %v438_v62 = vpop.f32.mrf.mxu2  ;;  %v457_v63 = vpop.f32.mrf.mxu3 }
 0x174   : > { %v441_v0 = vpop.f32.mrf.mxu2  ;;  %v460_v1 = vpop.f32.mrf.mxu3 }
 0x175   : > { %v467_v2 = vadd.f32 %v455_v61, %v441_v0  ;;  %v465_v3 = vsub.f32 %v436_v60, %v460_v1 }
 0x177   : > { %v471_v4 = vmul.f32 %v467_v2, %v467_v2  ;;  %v469_v5 = vmul.f32 %v465_v3, %v465_v3 }
 0x179   : > { %v473_v10 = vadd.f32 %v471_v4, %v469_v5 }
 0x17b   : > { %v475_v16 = vmul.f32 %v473_v10, %v366_v13 }
 0x17c   : > { %v443_v6 = vpop.f32.mrf.mxu2  ;;  %v462_v7 = vpop.f32.mrf.mxu3 }
 0x17d   : > { %v468_v8 = vadd.f32 %v457_v63, %v443_v6  ;;  %v466_v9 = vsub.f32 %v438_v62, %v462_v7 }
 0x17f   : > { %v472_v11 = vmul.f32 %v468_v8, %v468_v8  ;;  %v470_v12 = vmul.f32 %v466_v9, %v466_v9 }
 0x181   : > { %v474_v15 = vadd.f32 %v472_v11, %v470_v12 }
 0x183   : > { %v476_v17 = vmul.f32 %v474_v15, %v367_v14 }
 0x185   : > { %v477_v18 = vadd.f32 %v476_v17, %v475_v16 }
 0x187   : > { %478 = vadd.xlane.f32.xlu0 %v477_v18 }
 0x1fa   : > { %v479_v26 = vpop.xlane.xlu0 %478 }
 0x1fb   : > { %v480_v27 = vrot.slane %v479_v26, 4 }
 0x1fd   : > { %v481_v28 = vadd.f32 %v480_v27, %v479_v26 }
 0x1ff   : > { %v482_v29 = vrot.slane %v481_v28, 2 }
 0x201   : > { %v483_v30 = vadd.f32 %v482_v29, %v481_v28 }
 0x203   : > { %v484_v31 = vrot.slane %v483_v30, 1 }
 0x205   : > { %v485_v32 = vadd.f32 %v484_v31, %v483_v30 }
 0x207   : > { %657 = vpush %v485_v32 }
 0x238   : > { %s658_s4 = spop %657 }
 0x239   : > { %s489_s11 = smul.f32 0.001953125, %s658_s4 }
 0x23b   : > { %s490_s9 = sadd.f32 %s489_s11, %s488_s30 }
 0x23d   : > { %v491_v33 = vstv %s490_s9 }
 0x23e   : > { %492 = vst [vmem:[%s302_s29] sm:$0xff] %v491_v33 }
 0x23f   : > { %840 = shalt.err (!%p837_p2)
}
 0x240   : > { %667 = dma.vmem_to_hbm [thread:$0]  (%p992_p7), %s507_s14, 128, %s509_s8, %s494_s24  }
 0x241 PF: > { %s520_s12 = sand.u32 1, %s875_s18   ;;  %p1148_p12 = scmp.ge.s32.totalorder %s887_s21, 2 }
 0x242   : > { %s521_s16 = scalar_lea.sflag [#allocation4], %s520_s12 }
 0x243   : > { %p681_p13 = pnand %p1148_p12, %p957_p6 }
 0x245   : > { %p682_p0 = pneg %p681_p13 }
 0x247   : > { %870 = dma.done.wait (%p682_p0), %s521_s16, 128  }
 0x248   : > { %872 = vsyncadd (%p682_p0), %s521_s16, 4294967168  ;;  %s1149_s21 = sld [smem:[#allocation14_spill]]  ;;  %s1152_s18 = smov %s879_s19 }
 0x249   : > { %s1150_s17 = sld [smem:[#allocation13_spill]] }
 0x24a   : > { %s1151_s20 = sld [smem:[#allocation15_spill]] }
 0x24e   : > { %p21_p3 = scmp.ge.s32.totalorder %s1149_s21, 4  }
 0x24f   : > { %s1153_s19 = smov %s1150_s17 }
 0x250   :  { %23 = sbr.rel (!%p21_p3) target bundleno = 9 (0x9), region = 102 }
 0x255   :  { %527 = vsyncpa [#allocation3], 1 }
 0x256   :  { %529 = vsyncpa [#allocation3 + $0x1], 1 }
 0x257   :  { %530 = vsyncpa [#allocation6], 1 }
 0x258   :  { %532 = vsyncpa [#allocation6 + $0x1], 1 }
 0x259   :  { %533 = vsyncpa [#allocation4], 1 }
 0x25a   :  { %535 = vsyncpa [#allocation4 + $0x1], 1 }

</bundles_post_ra>
